<compile_context>
chip_gen: v5e
topology: v5e:2x2
jax: 0.10.0
libtpu: 0.0.40
codegen_flags: <defaults>
</compile_context>

<pallas_src>
import functools
import numpy as np
import jax
import jax.numpy as jnp
from jax.experimental import pallas as pl
from jax.experimental.pallas import tpu as pltpu

LANE = 128


def _round_up(x, m):
    return ((x + m - 1) // m) * m


# ---------------------------------------------------------------------------
# Pallas kernel: fused (im2col-matmul) conv + folded-BN (+ ReLU)
# ---------------------------------------------------------------------------
def _conv_bn_kernel(a_ref, w_ref, shift_ref, o_ref, *, apply_relu):
    acc = jnp.dot(a_ref[...], w_ref[...], preferred_element_type=jnp.float32)
    y = acc + shift_ref[...]                       # BN scale pre-folded into W
    if apply_relu:
        y = jnp.maximum(y, 0.0)
    o_ref[...] = y.astype(o_ref.dtype)


def conv_bn_matmul(a, w, scale, shift, *, apply_relu, out_dtype=jnp.float32,
                   tm=512):
    """a: (M, K) im2col patches; w: (K, Cout) f32; scale/shift: (Cout,) f32.

    Returns (M, Cout_pad) with Cout_pad = round_up(Cout, 128); columns >= Cout
    are exactly zero (weight/shift padded with zeros).
    """
    M, K = a.shape
    Cout = w.shape[1]
    Cout_pad = _round_up(Cout, LANE)

    # Fold BN scale into the weight columns (done once, on tiny weights) and
    # zero-pad the output-channel axis so kernel stores are lane-dense.
    w_folded = (w * scale[None, :]).astype(jnp.bfloat16)
    w_p = jnp.zeros((K, Cout_pad), jnp.bfloat16).at[:, :Cout].set(w_folded)
    shift_p = jnp.zeros((1, Cout_pad), jnp.float32).at[0, :Cout].set(shift)

    a_bf = a.astype(jnp.bfloat16)                  # MXU-native input width

    tm_eff = M if M <= tm else tm                  # one big block when M small
    grid_m = pl.cdiv(M, tm_eff)

    return pl.pallas_call(
        functools.partial(_conv_bn_kernel, apply_relu=apply_relu),
        out_shape=jax.ShapeDtypeStruct((M, Cout_pad), out_dtype),
        grid_spec=pltpu.PrefetchScalarGridSpec(
            num_scalar_prefetch=0,
            grid=(grid_m,),
            in_specs=[
                pl.BlockSpec((tm_eff, K), lambda i: (i, 0)),
                pl.BlockSpec((K, Cout_pad), lambda i: (0, 0)),
                pl.BlockSpec((1, Cout_pad), lambda i: (0, 0)),
            ],
            out_specs=pl.BlockSpec((tm_eff, Cout_pad), lambda i: (i, 0)),
        ),
        compiler_params=pltpu.CompilerParams(
            dimension_semantics=("parallel",)),
    )(a_bf, w_p, shift_p)


# ---------------------------------------------------------------------------
# Glue: padding / im2col (plain JAX; activations kept in bf16 where possible)
# ---------------------------------------------------------------------------
def get_padding(in_h, in_w, k_h, k_w, stride, d_h=1, d_w=1):
    # TODO(synk): get_padding is not defined in the reference snippet; using the
    # standard TC-ResNet "same"-style symmetric padding (half the dilated kernel).
    return ((d_h * (k_h - 1)) // 2, (d_w * (k_w - 1)) // 2)


def im2col(x_nhwc, kh, kw, s_h, s_w, p_h, p_w, d_h, d_w):
    N, H, W, C = x_nhwc.shape
    xp = jnp.pad(x_nhwc, ((0, 0), (p_h, p_h), (p_w, p_w), (0, 0)))
    Hp, Wp = H + 2 * p_h, W + 2 * p_w
    out_h = (Hp - (d_h * (kh - 1) + 1)) // s_h + 1
    out_w = (Wp - (d_w * (kw - 1) + 1)) // s_w + 1
    cols = []
    for i in range(kh):
        for j in range(kw):
            patch = xp[:,
                       i * d_h: i * d_h + s_h * (out_h - 1) + 1: s_h,
                       j * d_w: j * d_w + s_w * (out_w - 1) + 1: s_w,
                       :]
            cols.append(patch)
    a = jnp.concatenate(cols, axis=-1)             # (N, out_h, out_w, kh*kw*C)
    return a.reshape(N * out_h * out_w, kh * kw * C), (N, out_h, out_w)


# ---------------------------------------------------------------------------
# Module
# ---------------------------------------------------------------------------
class ResidualBlockNormPallas:
    def __init__(self, in_channels, in_height, in_width, out_channels, kernel,
                 dilation, stride=2, key=None):
        self.k_size = kernel
        self.dilation = dilation
        self.out_channels = out_channels
        self.stride2 = 1
        self.stride1 = stride if in_channels != out_channels else 1
        kh, kw = kernel
        self.pad1 = get_padding(in_height, in_width, kh, kw, self.stride1,
                                d_h=dilation, d_w=dilation)
        self.pad2 = get_padding(in_height, in_width, kh, kw, self.stride2,
                                d_h=dilation, d_w=dilation)
        self.eps = 1e-5

        keys = jax.random.split(key, 8)
        fan1 = in_channels * kh * kw
        fan2 = out_channels * kh * kw
        # conv weights in PyTorch OIHW layout
        self.w1 = jax.random.normal(keys[0], (out_channels, in_channels, kh, kw),
                                    jnp.float32) / np.sqrt(fan1)
        self.w2 = jax.random.normal(keys[1], (out_channels, out_channels, kh, kw),
                                    jnp.float32) / np.sqrt(fan2)
        # BatchNorm parameters (inference semantics: affine + running stats)
        self.gamma1 = 1.0 + 0.1 * jax.random.normal(keys[2], (out_channels,), jnp.float32)
        self.beta1 = 0.05 * jnp.arange(out_channels, dtype=jnp.float32)
        self.mean1 = 0.1 * jax.random.normal(keys[3], (out_channels,), jnp.float32)
        self.var1 = 1.0 + 0.2 * jnp.abs(jax.random.normal(keys[4], (out_channels,), jnp.float32))
        self.gamma2 = 1.0 + 0.1 * jax.random.normal(keys[5], (out_channels,), jnp.float32)
        self.beta2 = -0.03 * jnp.arange(out_channels, dtype=jnp.float32)
        self.mean2 = 0.1 * jax.random.normal(keys[6], (out_channels,), jnp.float32)
        self.var2 = 1.0 + 0.2 * jnp.abs(jax.random.normal(keys[7], (out_channels,), jnp.float32))

    @staticmethod
    def _w_to_mat(w):
        # OIHW -> (kh*kw*Cin, Cout), matching im2col's (kh, kw, C) flattening order
        O = w.shape[0]
        return jnp.transpose(w, (2, 3, 1, 0)).reshape(-1, O)

    def __call__(self, x_nchw):
        kh, kw = self.k_size
        d = self.dilation
        C = self.out_channels
        x = jnp.transpose(x_nchw, (0, 2, 3, 1)).astype(jnp.float32)   # NHWC

        # ---- conv1 + bn1 + relu (one fused Pallas kernel) -------------------
        a1, (N, H1, W1) = im2col(x, kh, kw, self.stride1, self.stride1,
                                 self.pad1[0], self.pad1[1], d, d)
        scale1 = self.gamma1 * jax.lax.rsqrt(self.var1 + self.eps)
        shift1 = self.beta1 - self.mean1 * scale1
        y1 = conv_bn_matmul(a1, self._w_to_mat(self.w1), scale1, shift1,
                            apply_relu=True, out_dtype=jnp.bfloat16)
        # drop the lane-padded (all-zero) channels before the second im2col so
        # K2 stays kh*kw*Cout instead of kh*kw*128
        y1 = y1[:, :C].reshape(N, H1, W1, C)

        # ---- conv2 + bn2 (one fused Pallas kernel) --------------------------
        a2, (N2, H2, W2) = im2col(y1, kh, kw, self.stride2, self.stride2,
                                  self.pad2[0], self.pad2[1], d, d)
        scale2 = self.gamma2 * jax.lax.rsqrt(self.var2 + self.eps)
        shift2 = self.beta2 - self.mean2 * scale2
        y2 = conv_bn_matmul(a2, self._w_to_mat(self.w2), scale2, shift2,
                            apply_relu=False, out_dtype=jnp.float32)
        y2 = y2[:, :C].reshape(N2, H2, W2, C)
        return jnp.transpose(y2, (0, 3, 1, 2))                        # NCHW

    # pure-JAX f32 reference (same semantics) for verification
    def reference(self, x_nchw):
        d = self.dilation

        def conv(x, w, s, pad):
            return jax.lax.conv_general_dilated(
                x, w, window_strides=(s, s),
                padding=[(pad[0], pad[0]), (pad[1], pad[1])],
                rhs_dilation=(d, d),
                dimension_numbers=('NCHW', 'OIHW', 'NCHW'))

        def bn(x, g, b, m, v):
            sc = (g * jax.lax.rsqrt(v + self.eps))[None, :, None, None]
            return (x - m[None, :, None, None]) * sc + b[None, :, None, None]

        y = conv(x_nchw, self.w1, self.stride1, self.pad1)
        y = jnp.maximum(bn(y, self.gamma1, self.beta1, self.mean1, self.var1), 0.0)
        y = conv(y, self.w2, self.stride2, self.pad2)
        y = bn(y, self.gamma2, self.beta2, self.mean2, self.var2)
        return y


if __name__ == "__main__":
    key = jax.random.PRNGKey(0)
    N, Cin, H, W = 2, 4, 16, 16
    Cout = 8
    kernel = (3, 3)
    dilation = 1

    block = ResidualBlockNormPallas(Cin, H, W, Cout, kernel, dilation,
                                    stride=2, key=key)
    x = jax.random.normal(jax.random.fold_in(key, 99), (N, Cin, H, W), jnp.float32)

    out = block(x)
    out = jax.block_until_ready(out)

    ref = block.reference(x)
    assert out.shape == ref.shape, (out.shape, ref.shape)
    # bf16 MXU inputs -> slightly looser tolerance vs the f32 reference
    np.testing.assert_allclose(np.asarray(out), np.asarray(ref),
                               rtol=5e-2, atol=5e-2)
    print("KERNEL_OK")
</pallas_src>

<mosaic_0001>
module attributes {stable_mosaic.version = 11 : i64} {
  func.func @_conv_bn_kernel(%arg0: i32, %arg1: memref<128x36xbf16, #tpu.memory_space<vmem>>, %arg2: memref<36x128xbf16, #tpu.memory_space<vmem>>, %arg3: memref<1x128xf32, #tpu.memory_space<vmem>>, %arg4: memref<128x128xbf16, #tpu.memory_space<vmem>>) attributes {dimension_semantics = [#tpu.dimension_semantics<parallel>], iteration_bounds = array<i64: 1>, scalar_prefetch = 0 : i64, scratch_operands = 0 : i64, tpu.core_type = #tpu.core_type<tc>, window_params = [{transform_indices = @transform_0, window_bounds = array<i64: 128, 36>}, {pipeline_mode = #tpu.pipeline_mode<synchronous>, transform_indices = @transform_1, window_bounds = array<i64: 36, 128>}, {pipeline_mode = #tpu.pipeline_mode<synchronous>, transform_indices = @transform_2, window_bounds = array<i64: 1, 128>}, {transform_indices = @transform_3, window_bounds = array<i64: 128, 128>}]} {
    %c0 = arith.constant 0 : index
    %c0_0 = arith.constant 0 : index
    %0 = vector.load %arg1[%c0, %c0_0] : memref<128x36xbf16, #tpu.memory_space<vmem>>, vector<128x36xbf16>
    %c0_1 = arith.constant 0 : index
    %c0_2 = arith.constant 0 : index
    %1 = vector.load %arg2[%c0_1, %c0_2] : memref<36x128xbf16, #tpu.memory_space<vmem>>, vector<36x128xbf16>
    %cst = arith.constant dense<0.000000e+00> : vector<128x128xf32>
    %2 = tpu.matmul %0, %1, %cst {dimension_numbers = #tpu.dot_dimension_numbers<[1], [0], [0], [1], [0, 0, 1, 1], [], []>} : vector<128x36xbf16>, vector<36x128xbf16>, vector<128x128xf32> -> vector<128x128xf32>
    %c0_3 = arith.constant 0 : index
    %c0_4 = arith.constant 0 : index
    %3 = vector.load %arg3[%c0_3, %c0_4] : memref<1x128xf32, #tpu.memory_space<vmem>>, vector<1x128xf32>
    %4 = vector.broadcast %3 : vector<1x128xf32> to vector<128x128xf32>
    %5 = arith.addf %2, %4 : vector<128x128xf32>
    %cst_5 = arith.constant 0.000000e+00 : f32
    %6 = vector.broadcast %cst_5 : f32 to vector<128x128xf32>
    %7 = arith.maximumf %5, %6 : vector<128x128xf32>
    %8 = arith.truncf %7 : vector<128x128xf32> to vector<128x128xbf16>
    %c0_6 = arith.constant 0 : index
    %c0_7 = arith.constant 0 : index
    %9 = vector.load %arg4[%c0_6, %c0_7] : memref<128x128xbf16, #tpu.memory_space<vmem>>, vector<128x128xbf16>
    tpu.vector_store %arg4[%c0_6, %c0_7], %8 {strides = array<i32>} : memref<128x128xbf16, #tpu.memory_space<vmem>>, vector<128x128xbf16>,
    return
  }
  func.func @transform_0(%arg0: i32) -> (i32, i32) {
    %c0_i32 = arith.constant 0 : i32
    %c0_i32_0 = arith.constant 0 : i32
    return %arg0, %c0_i32 : i32, i32
  }
  func.func @transform_1(%arg0: i32) -> (i32, i32) {
    %c0_i32 = arith.constant 0 : i32
    %c0_i32_0 = arith.constant 0 : i32
    %c0_i32_1 = arith.constant 0 : i32
    return %c0_i32, %c0_i32_0 : i32, i32
  }
  func.func @transform_2(%arg0: i32) -> (i32, i32) {
    %c0_i32 = arith.constant 0 : i32
    %c0_i32_0 = arith.constant 0 : i32
    %c0_i32_1 = arith.constant 0 : i32
    return %c0_i32, %c0_i32_0 : i32, i32
  }
  func.func @transform_3(%arg0: i32) -> (i32, i32) {
    %c0_i32 = arith.constant 0 : i32
    %c0_i32_0 = arith.constant 0 : i32
    return %arg0, %c0_i32 : i32, i32
  }
}

</mosaic_0001>

<bundles_post_ra>
// kernel: tpu_custom_call.1
= control target key start
LH: loop header
LB: loop body
LE: loop exit
PB: predicated region body
PF: predicated region fallthrough
CT: control target
= control target key end

     0   :  { %vm121_vm0 = vcmask 1041408   ;;  %s454_s0 = inlined_call_operand.vmem [shape: bf16[128,36], index: 0, kind: input, shape index: {}]   ;;  %s455_s1 = inlined_call_operand.vmem [shape: bf16[36,128], index: 1, kind: input, shape index: {}]   ;;  %s456_s2 = inlined_call_operand.vmem [shape: f32[1,128], index: 2, kind: input, shape index: {}]   ;;  %s457_s3 = inlined_call_operand.hbm [shape: bf16[128,128], index: 3, kind: output, shape index: {}]  }
   0x1   :  { %v36_v0 = vld [vmem:[%s455_s1 + $0x10] sm:$0x3] }
   0x2   :  { %v90_v1 = vunpack.c.l.b16 %v36_v0 }
   0x4   :  { %v93_v2 = vpack.c.b16 %v90_v1, %v90_v1 }
   0x5   :  { %8 = vsyncpa [#allocation3], 0  ;;  %v297_v4 = vld [vmem:[%s455_s1 + $0x8] sm:$0xff]  ;;  %v296_v5 = vld [vmem:[%s455_s1] sm:$0xff]  ;;  %vm96_vm1 = vcmask 293888   ;;  %s228_s10 = sshll.u32 %s457_s3, 4  ;;  %s229_s10 = int_to_ptr.hbm [resolvable:$true] %s228_s10 }
   0x6   :  { %v123_v3 = vsel %vm121_vm0, %v93_v2, 0  ;;  %v288_v6 = vld [vmem:[%s454_s0] sm:$0xff]  ;;  %v290_v7 = vld [vmem:[%s454_s0 + $0x10] sm:$0xff]  ;;  %v289_v10 = vld [vmem:[%s454_s0 + $0x8] sm:$0xff]  ;;  %s385_s11 = smov 64   ;;  %s386_s12 = smov 4  }
   0x7   :  { %130 = vmatpush.bf16.msra.mxu0 %v123_v3  ;;  %345 = vmatpush.bf16.msra.mxu1 %v123_v3  ;;  %v292_v8 = vld [vmem:[%s454_s0 + $0x20] sm:$0xff]  ;;  %v294_v9 = vld [vmem:[%s454_s0 + $0x30] sm:$0xff]  ;;  %v291_v11 = vld [vmem:[%s454_s0 + $0x18] sm:$0xff] }
   0x8   :  { %346 = vmatpush.bf16.msra.mxu2 %v123_v3  ;;  %347 = vmatpush.bf16.msra.mxu3 %v123_v3  ;;  %v293_v12 = vld [vmem:[%s454_s0 + $0x28] sm:$0xff]  ;;  %v295_v13 = vld [vmem:[%s454_s0 + $0x38] sm:$0xff]  ;;  %v357_v16 = vld [vmem:[%s456_s2] ss:$0 sm:$0xff]  ;;  %s384_s0 = smov [#allocation2]  }
   0x9   :  { %s226_s2 = sshll.u32 %s384_s0, 4  ;;  %s227_s2 = int_to_ptr.vmem [resolvable:$true] %s226_s2 }
   0xb   :  { %131 = vmatpush.bf16.msra.mxu0 %v297_v4  ;;  %348 = vmatpush.bf16.msra.mxu1 %v297_v4 }
   0xc   :  { %349 = vmatpush.bf16.msra.mxu2 %v297_v4  ;;  %350 = vmatpush.bf16.msra.mxu3 %v297_v4 }
   0xf   :  { %132 = vmatpush.bf16.msra.mxu0 %v296_v5  ;;  %351 = vmatpush.bf16.msra.mxu1 %v296_v5 }
  0x10   :  { %352 = vmatpush.bf16.msra.mxu2 %v296_v5  ;;  %353 = vmatpush.bf16.msra.mxu3 %v296_v5 }
  0x12   :  { %280 = vmatmul.msk.bf16.vlgmr.msra.gmra.mxu0 %vm96_vm1, %v288_v6  ;;  %282 = vmatmul.msk.bf16.vlgmr.msra.gmra.mxu1 %vm96_vm1, %v290_v7 }
  0x13   :  { %284 = vmatmul.msk.bf16.vlgmr.msra.gmra.mxu2 %vm96_vm1, %v292_v8  ;;  %286 = vmatmul.msk.bf16.vlgmr.msra.gmra.mxu3 %vm96_vm1, %v294_v9 }
  0x22   :  { %281 = vmatmul.msk.bf16.gmra.mxu0 %vm96_vm1, %v289_v10  ;;  %283 = vmatmul.msk.bf16.gmra.mxu1 %vm96_vm1, %v291_v11 }
  0x23   :  { %285 = vmatmul.msk.bf16.gmra.mxu2 %vm96_vm1, %v293_v12  ;;  %287 = vmatmul.msk.bf16.gmra.mxu3 %vm96_vm1, %v295_v13 }
  0x8f   :  { %v134_v14 = vpop.f32.mrf.mxu0  ;;  %v144_v15 = vpop.f32.mrf.mxu1 }
  0x90   :  { %v135_v17 = vadd.f32 %v357_v16, %v134_v14  ;;  %v145_v18 = vadd.f32 %v357_v16, %v144_v15 }
  0x92   :  { %v174_v25 = vmax.f32 %v135_v17, 0.0  ;;  %v178_v26 = vmax.f32 %v145_v18, 0.0 }
  0x96   :  { %v154_v19 = vpop.f32.mrf.mxu2  ;;  %v164_v20 = vpop.f32.mrf.mxu3 }
  0x97   :  { %v136_v21 = vpop.f32.mrf.mxu0  ;;  %v146_v22 = vpop.f32.mrf.mxu1  ;;  %v155_v31 = vadd.f32 %v357_v16, %v154_v19  ;;  %v165_v32 = vadd.f32 %v357_v16, %v164_v20 }
  0x98   :  { %v137_v23 = vadd.f32 %v357_v16, %v136_v21  ;;  %v147_v24 = vadd.f32 %v357_v16, %v146_v22 }
  0x99   :  { %v182_v39 = vmax.f32 %v155_v31, 0.0  ;;  %v186_v40 = vmax.f32 %v165_v32, 0.0 }
  0x9a   :  { %v175_v27 = vmax.f32 %v137_v23, 0.0  ;;  %v179_v28 = vmax.f32 %v147_v24, 0.0 }
  0x9c   :  { %v301_v29 = vpack.c.bf16 %v175_v27, %v174_v25  ;;  %v311_v30 = vpack.c.bf16 %v179_v28, %v178_v26 }
  0x9e   :  { %302 = vst [vmem:[#allocation2] sm:$0xff] %v301_v29   ;;  %v156_v33 = vpop.f32.mrf.mxu2  ;;  %v166_v34 = vpop.f32.mrf.mxu3 }
  0x9f   :  { %339 = vst [vmem:[#allocation2 + $0x10] sm:$0xff] %v311_v30   ;;  %v157_v35 = vadd.f32 %v357_v16, %v156_v33  ;;  %v167_v36 = vadd.f32 %v357_v16, %v166_v34  ;;  %v139_v37 = vpop.f32.mrf.mxu0  ;;  %v149_v38 = vpop.f32.mrf.mxu1 }
  0xa0   :  { %v140_v45 = vadd.f32 %v357_v16, %v139_v37  ;;  %v150_v46 = vadd.f32 %v357_v16, %v149_v38 }
  0xa1   :  { %v183_v41 = vmax.f32 %v157_v35, 0.0  ;;  %v187_v42 = vmax.f32 %v167_v36, 0.0 }
  0xa2   :  { %v176_v53 = vmax.f32 %v140_v45, 0.0  ;;  %v180_v54 = vmax.f32 %v150_v46, 0.0 }
  0xa3   :  { %v321_v43 = vpack.c.bf16 %v183_v41, %v182_v39  ;;  %v331_v44 = vpack.c.bf16 %v187_v42, %v186_v40 }
  0xa5   :  { %341 = vst [vmem:[#allocation2 + $0x20] sm:$0xff] %v321_v43  }
  0xa6   :  { %343 = vst [vmem:[#allocation2 + $0x30] sm:$0xff] %v331_v44   ;;  %v159_v47 = vpop.f32.mrf.mxu2  ;;  %v169_v48 = vpop.f32.mrf.mxu3 }
  0xa7   :  { %v141_v49 = vpop.f32.mrf.mxu0  ;;  %v151_v50 = vpop.f32.mrf.mxu1  ;;  %v160_v59 = vadd.f32 %v357_v16, %v159_v47  ;;  %v170_v60 = vadd.f32 %v357_v16, %v169_v48 }
  0xa8   :  { %v142_v51 = vadd.f32 %v357_v16, %v141_v49  ;;  %v152_v52 = vadd.f32 %v357_v16, %v151_v50 }
  0xa9   :  { %v184_v1 = vmax.f32 %v160_v59, 0.0  ;;  %v188_v2 = vmax.f32 %v170_v60, 0.0 }
  0xaa   :  { %v177_v55 = vmax.f32 %v142_v51, 0.0  ;;  %v181_v56 = vmax.f32 %v152_v52, 0.0 }
  0xac   :  { %v306_v57 = vpack.c.bf16 %v177_v55, %v176_v53  ;;  %v316_v58 = vpack.c.bf16 %v181_v56, %v180_v54 }
  0xae   :  { %338 = vst [vmem:[#allocation2 + $0x8] sm:$0xff] %v306_v57   ;;  %v161_v61 = vpop.f32.mrf.mxu2  ;;  %v171_v62 = vpop.f32.mrf.mxu3 }
  0xaf   :  { %340 = vst [vmem:[#allocation2 + $0x18] sm:$0xff] %v316_v58   ;;  %v162_v63 = vadd.f32 %v357_v16, %v161_v61  ;;  %v172_v0 = vadd.f32 %v357_v16, %v171_v62 }
  0xb1   :  { %v185_v3 = vmax.f32 %v162_v63, 0.0  ;;  %v189_v4 = vmax.f32 %v172_v0, 0.0 }
  0xb3   :  { %v326_v5 = vpack.c.bf16 %v185_v3, %v184_v1  ;;  %v336_v6 = vpack.c.bf16 %v189_v4, %v188_v2 }
  0xb5   :  { %342 = vst [vmem:[#allocation2 + $0x28] sm:$0xff] %v326_v5  }
  0xb6   :  { %344 = vst [vmem:[#allocation2 + $0x38] sm:$0xff] %v336_v6  }
  0xb7   :  { %234 = dma.vmem_to_hbm [thread:$0]  %s227_s2, 1024, %s229_s10, [#allocation3], %s385_s11, %s385_s11, %s386_s12  }
  0xb8   :  { %382 = dma.done.wait [#allocation3], 1024  }
  0xb9   :  { %383 = vsyncadd [#allocation3], 4294966272 }
  0xba   :  { %239 = vsyncpa [#allocation3], 1 }

</bundles_post_ra>
